<compile_context>
chip_gen: v6e
topology: v6e:2x2x1
jax: 0.10.0
libtpu: 0.0.40
codegen_flags: <defaults>
</compile_context>

<pallas_src>
import functools

import jax
import jax.numpy as jnp
from jax import lax
from jax.experimental import pallas as pl
from jax.experimental.pallas import tpu as pltpu

LEAKY_SLOPE = 0.01
NEG_BIG = -1e30


def _leaky(x):
    return jnp.where(x >= 0, x, LEAKY_SLOPE * x)


def _linear(x, w_ref, b_ref):
    # Small-K MLP matmul: f32 in / f32 accumulate.
    return jnp.dot(x, w_ref[...], preferred_element_type=jnp.float32) + b_ref[...]


# ------------------------ kernel 1: phi MLP + attention vectors ---------------------
def _phi_kernel(h_ref, w1, b1, w2, b2, wa, ba, hphi_ref, att_ref):
    h = _leaky(_linear(h_ref[...], w1, b1))
    h = _leaky(_linear(h, w2, b2))
    hphi_ref[...] = h.astype(jnp.bfloat16)            # cast once, stored bf16 in HBM
    att_ref[...] = _linear(h, wa, ba).astype(jnp.bfloat16)


# ------------------- kernel 2: masked attention softmax + mixing + rho --------------
def _attn_rho_kernel(att_ref, hphi_ref, bq_ref, brow_ref,
                     w_r1, b_r1, w_r2, b_r2, hmix_ref, *, tq):
    i = pl.program_id(0)
    row0 = pl.multiple_of(i * tq, tq)

    q_a = att_ref[pl.ds(row0, tq), :]                              # (tq, D) bf16
    # logits = q_a @ att.T without materializing a transpose (same contraction
    # pattern as the reference flash-attention kernel -> native MXU feed).
    logits = lax.dot_general(q_a, att_ref[...], (((1,), (1,)), ((), ())),
                             preferred_element_type=jnp.float32)   # (tq, Np)

    mask = bq_ref[...] == brow_ref[...]                            # (tq, Np) bool

    # Reproduces the PyTorch (dot*mask).max semantics exactly: the row max is
    # clamped at 0 when every in-segment logit is negative — intentional, do not "fix".
    max_v = jnp.max(jnp.where(mask, logits, 0.0), axis=1, keepdims=True)
    e = jnp.exp(jnp.where(mask, logits - max_v, NEG_BIG))          # out-of-segment -> 0
    denom = jnp.sum(e, axis=1, keepdims=True)

    pv = jnp.dot(e.astype(jnp.bfloat16), hphi_ref[...],
                 preferred_element_type=jnp.float32)               # (tq, D)
    hmix = pv * pl.reciprocal(denom, approx=True)                  # normalize post-matmul

    hmix = _leaky(_linear(hmix, w_r1, b_r1))
    hmix = _leaky(_linear(hmix, w_r2, b_r2))
    hmix_ref[...] = hmix


# ----------------- kernel 3: gate MLP + segment softmax + segment pooling -----------
def _gate_pool_kernel(hm_ref, gids_ref, brow_ref,
                      w_g1, b_g1, w_g2, b_g2, w_g3_row, b_g3,
                      hpool_ref, scores_ref):
    hm = hm_ref[...]                                               # (Np, D) f32
    g = _leaky(_linear(hm, w_g1, b_g1))                            # (Np, Hd)
    g = _leaky(_linear(g, w_g2, b_g2))                             # (Np, Hd)
    # hidden -> 1 projection emitted directly in lane-dense row layout (1, Np).
    g_row = lax.dot_general(w_g3_row[...], g, (((1,), (1,)), ((), ())),
                            preferred_element_type=jnp.float32) + b_g3[...]

    onehot = gids_ref[...] == brow_ref[...]                        # (G, Np) bool
    onehot_f = onehot.astype(jnp.float32)
    valid = brow_ref[...] >= 0                                     # padded cols -> False

    # scatter_softmax with only N exps: per-graph max / denom via one-hot reductions.
    seg_max = jnp.max(jnp.where(onehot, g_row, NEG_BIG), axis=1, keepdims=True)   # (G,1)
    gmax_row = jnp.sum(onehot_f * seg_max, axis=0, keepdims=True)                 # (1,Np)
    e_row = jnp.where(valid, jnp.exp(g_row - gmax_row), 0.0)                      # (1,Np)
    seg_den = jnp.sum(jnp.where(onehot, e_row, 0.0), axis=1, keepdims=True)       # (G,1)
    gden_row = jnp.sum(onehot_f * seg_den, axis=0, keepdims=True)                 # (1,Np)
    gden_safe = jnp.where(valid, gden_row, 1.0)
    scores_row = jnp.where(valid, e_row / gden_safe, 0.0)          # exact div for output
    scores_ref[...] = scores_row

    # scatter_add: h_pool[g] = sum_n 1[batch[n]==g] * scores[n] * hm[n]
    hpool_ref[...] = jnp.dot(onehot_f * scores_row, hm,
                             preferred_element_type=jnp.float32)   # (G, D)


# ------------------------------------ wrapper ---------------------------------------
def _round_up(x, m):
    return ((x + m - 1) // m) * m


def _vmem_capacity_bytes():
    try:
        cap = int(getattr(pltpu.get_tpu_info(), "vmem_capacity_bytes"))
        if cap > 0:
            return cap
    except Exception:
        pass
    return 64 * 1024 * 1024      # conservative (v7x per-core) fallback


def _pick_tiling(n, d, max_tile):
    """Generation-aware row tile / padded size / vmem limit."""
    budget = int(_vmem_capacity_bytes() * 0.8)
    tq = min(max_tile, _round_up(n, 8))
    while True:
        np_ = _round_up(n, tq)
        # resident bf16 phi/att (2 * Np*D*2B) + ~5 (tq, Np) f32 temps + slack
        need = 4 * np_ * d + 20 * tq * np_ + (2 << 20)
        if need <= budget or tq <= 64:
            return tq, np_, budget
        tq = max(64, ((tq // 2) // 8) * 8)


def self_attention_pool(H, batch, num_graphs, params, *, max_tile=256):
    N, D = H.shape
    hidden = params["g1_w"].shape[1]
    tq, Np, vmem_limit = _pick_tiling(N, D, max_tile)
    n_tiles = Np // tq

    batch = batch.astype(jnp.int32)
    if Np != N:
        # Pad to a tile multiple; dummy rows get batch id = -1 so every mask /
        # one-hot excludes them (their scores are forced to 0 in kernel 3).
        H = jnp.pad(H, ((0, Np - N), (0, 0)))
        batch = jnp.concatenate([batch, jnp.full((Np - N,), -1, jnp.int32)])

    bcol = batch.reshape(Np, 1)
    brow = batch.reshape(1, Np)
    gids = jnp.arange(num_graphs, dtype=jnp.int32).reshape(num_graphs, 1)
    g3_row = params["g3_w"].reshape(1, hidden)            # (hidden, 1) -> (1, hidden)

    def full(x):
        return pl.BlockSpec(x.shape, lambda i: (0, 0))

    row_tile = pl.BlockSpec((tq, D), lambda i: (i, 0))

    cp_par = pltpu.CompilerParams(dimension_semantics=("parallel",),
                                  vmem_limit_bytes=vmem_limit)
    cp_arb = pltpu.CompilerParams(dimension_semantics=("arbitrary",),
                                  vmem_limit_bytes=vmem_limit)

    # ---- kernel 1: phi MLP + attention vectors (row-tiled, parallel) ---------------
    phi_in = [H, params["phi1_w"], params["phi1_b"], params["phi2_w"],
              params["phi2_b"], params["att_w"], params["att_b"]]
    h_phi, att = pl.pallas_call(
        _phi_kernel,
        grid=(n_tiles,),
        out_shape=(jax.ShapeDtypeStruct((Np, D), jnp.bfloat16),
                   jax.ShapeDtypeStruct((Np, D), jnp.bfloat16)),
        in_specs=[row_tile] + [full(x) for x in phi_in[1:]],
        out_specs=(row_tile, row_tile),
        compiler_params=cp_par,
    )(*phi_in)

    # ---- kernel 2: masked attention softmax + mixing + rho (row-tiled, parallel) ---
    attn_in = [att, h_phi, bcol, brow,
               params["rho1_w"], params["rho1_b"],
               params["rho2_w"], params["rho2_b"]]
    hmix = pl.pallas_call(
        functools.partial(_attn_rho_kernel, tq=tq),
        grid=(n_tiles,),
        out_shape=jax.ShapeDtypeStruct((Np, D), jnp.float32),
        in_specs=[full(att), full(h_phi),
                  pl.BlockSpec((tq, 1), lambda i: (i, 0)), full(brow),
                  full(params["rho1_w"]), full(params["rho1_b"]),
                  full(params["rho2_w"]), full(params["rho2_b"])],
        out_specs=row_tile,
        compiler_params=cp_par,
    )(*attn_in)

    # ---- kernel 3: gate MLP + segment softmax + segment pooling --------------------
    gate_in = [hmix, gids, brow,
               params["g1_w"], params["g1_b"], params["g2_w"], params["g2_b"],
               g3_row, params["g3_b"]]
    h_pool, scores_row = pl.pallas_call(
        _gate_pool_kernel,
        grid=(1,),
        out_shape=(jax.ShapeDtypeStruct((num_graphs, D), jnp.float32),
                   jax.ShapeDtypeStruct((1, Np), jnp.float32)),
        in_specs=[full(x) for x in gate_in],
        out_specs=(pl.BlockSpec((num_graphs, D), lambda i: (0, 0)),
                   pl.BlockSpec((1, Np), lambda i: (0, 0))),
        compiler_params=cp_arb,
    )(*gate_in)

    return h_pool, scores_row[:, :N].reshape(N, 1)


# --------------------------- pure-JAX reference for validation ----------------------
def reference(H, batch, num_graphs, params):
    def leaky(x):
        return jnp.where(x >= 0, x, 0.01 * x)

    def lin(x, w, b):
        return x @ w + b

    h = leaky(lin(H, params["phi1_w"], params["phi1_b"]))
    h = leaky(lin(h, params["phi2_w"], params["phi2_b"]))
    a = lin(h, params["att_w"], params["att_b"])
    dot = a @ a.T
    mask = (batch[:, None] == batch[None, :]).astype(jnp.float32)
    max_v = jnp.max(dot * mask, axis=1, keepdims=True)
    md = (dot - max_v) * mask
    e = jnp.exp(md)
    attn = e / jnp.sum(e * mask, axis=1, keepdims=True)
    attn = attn * mask
    hm = attn @ h
    hm = leaky(lin(hm, params["rho1_w"], params["rho1_b"]))
    hm = leaky(lin(hm, params["rho2_w"], params["rho2_b"]))
    g = leaky(lin(hm, params["g1_w"], params["g1_b"]))
    g = leaky(lin(g, params["g2_w"], params["g2_b"]))
    g = lin(g, params["g3_w"], params["g3_b"])            # (N, 1)
    seg_max = jnp.max(jnp.where(mask > 0, g[:, 0][None, :], -1e30),
                      axis=1, keepdims=True)
    denom = jnp.sum(jnp.exp(g[:, 0][None, :] - seg_max) * mask,
                    axis=1, keepdims=True)
    scores = jnp.exp(g - seg_max) / denom
    onehot = (jnp.arange(num_graphs)[:, None] == batch[None, :]).astype(jnp.float32)
    h_pool = onehot @ (hm * scores)
    return h_pool, scores


def make_params(key, d, hidden):
    def lin_init(k, fin, fout, scale=0.1):
        kw, kb = jax.random.split(k)
        w = scale * jax.random.normal(kw, (fin, fout), jnp.float32)  # [in, out]
        b = scale * jax.random.normal(kb, (1, fout), jnp.float32)
        return w, b

    keys = jax.random.split(key, 8)
    p = {}
    p["phi1_w"], p["phi1_b"] = lin_init(keys[0], d, d)
    p["phi2_w"], p["phi2_b"] = lin_init(keys[1], d, d)
    p["att_w"], p["att_b"] = lin_init(keys[2], d, d)
    p["rho1_w"], p["rho1_b"] = lin_init(keys[3], d, d)
    p["rho2_w"], p["rho2_b"] = lin_init(keys[4], d, d)
    p["g1_w"], p["g1_b"] = lin_init(keys[5], d, hidden)
    p["g2_w"], p["g2_b"] = lin_init(keys[6], hidden, hidden)
    p["g3_w"], p["g3_b"] = lin_init(keys[7], hidden, 1)
    return p


if __name__ == "__main__":
    N, D, HIDDEN, G = 8, 16, 32, 2
    key = jax.random.PRNGKey(0)
    k_h, k_p = jax.random.split(key)

    H = jax.random.normal(k_h, (N, D), jnp.float32)
    batch = jnp.array([0, 0, 0, 0, 1, 1, 1, 1], dtype=jnp.int32)
    params = make_params(k_p, D, HIDDEN)

    h_pool, scores = self_attention_pool(H, batch, G, params)
    jax.block_until_ready((h_pool, scores))

    hp_ref, sc_ref = reference(H, batch, G, params)
    assert h_pool.shape == (G, D) and scores.shape == (N, 1)
    # bf16 MXU inputs + approx reciprocal in the attention path => relaxed tolerance.
    assert jnp.allclose(h_pool, hp_ref, rtol=2e-2, atol=2e-2), "h_pool mismatch"
    assert jnp.allclose(scores, sc_ref, rtol=2e-2, atol=2e-2), "scores mismatch"

    print("KERNEL_OK")
</pallas_src>

<mosaic_0001>
module attributes {stable_mosaic.version = 11 : i64} {
  func.func @_phi_kernel(%arg0: i32, %arg1: memref<8x16xf32, #tpu.memory_space<vmem>>, %arg2: memref<16x16xf32, #tpu.memory_space<vmem>>, %arg3: memref<1x16xf32, #tpu.memory_space<vmem>>, %arg4: memref<16x16xf32, #tpu.memory_space<vmem>>, %arg5: memref<1x16xf32, #tpu.memory_space<vmem>>, %arg6: memref<16x16xf32, #tpu.memory_space<vmem>>, %arg7: memref<1x16xf32, #tpu.memory_space<vmem>>, %arg8: memref<8x16xbf16, #tpu.memory_space<vmem>>, %arg9: memref<8x16xbf16, #tpu.memory_space<vmem>>) attributes {dimension_semantics = [#tpu.dimension_semantics<parallel>], iteration_bounds = array<i64: 1>, scalar_prefetch = 0 : i64, scratch_operands = 0 : i64, tpu.core_type = #tpu.core_type<tc>, window_params = [{transform_indices = @transform_0, window_bounds = array<i64: 8, 16>}, {pipeline_mode = #tpu.pipeline_mode<synchronous>, transform_indices = @transform_1, window_bounds = array<i64: 16, 16>}, {pipeline_mode = #tpu.pipeline_mode<synchronous>, transform_indices = @transform_2, window_bounds = array<i64: 1, 16>}, {pipeline_mode = #tpu.pipeline_mode<synchronous>, transform_indices = @transform_3, window_bounds = array<i64: 16, 16>}, {pipeline_mode = #tpu.pipeline_mode<synchronous>, transform_indices = @transform_4, window_bounds = array<i64: 1, 16>}, {pipeline_mode = #tpu.pipeline_mode<synchronous>, transform_indices = @transform_5, window_bounds = array<i64: 16, 16>}, {pipeline_mode = #tpu.pipeline_mode<synchronous>, transform_indices = @transform_6, window_bounds = array<i64: 1, 16>}, {transform_indices = @transform_7, window_bounds = array<i64: 8, 16>}, {transform_indices = @transform_8, window_bounds = array<i64: 8, 16>}]} {
    %c0 = arith.constant 0 : index
    %c0_0 = arith.constant 0 : index
    %0 = vector.load %arg1[%c0, %c0_0] : memref<8x16xf32, #tpu.memory_space<vmem>>, vector<8x16xf32>
    %c0_1 = arith.constant 0 : index
    %c0_2 = arith.constant 0 : index
    %1 = vector.load %arg2[%c0_1, %c0_2] : memref<16x16xf32, #tpu.memory_space<vmem>>, vector<16x16xf32>
    %cst = arith.constant dense<0.000000e+00> : vector<8x16xf32>
    %2 = tpu.matmul %0, %1, %cst {dimension_numbers = #tpu.dot_dimension_numbers<[1], [0], [0], [1], [0, 0, 1, 1], [], []>} : vector<8x16xf32>, vector<16x16xf32>, vector<8x16xf32> -> vector<8x16xf32>
    %c0_3 = arith.constant 0 : index
    %c0_4 = arith.constant 0 : index
    %3 = vector.load %arg3[%c0_3, %c0_4] : memref<1x16xf32, #tpu.memory_space<vmem>>, vector<1x16xf32>
    %4 = vector.broadcast %3 : vector<1x16xf32> to vector<8x16xf32>
    %5 = arith.addf %2, %4 : vector<8x16xf32>
    %cst_5 = arith.constant 0.000000e+00 : f32
    %6 = vector.broadcast %cst_5 : f32 to vector<8x16xf32>
    %7 = arith.cmpf oge, %5, %6 : vector<8x16xf32>
    %cst_6 = arith.constant 0.00999999977 : f32
    %8 = vector.broadcast %cst_6 : f32 to vector<8x16xf32>
    %9 = arith.mulf %8, %5 : vector<8x16xf32>
    %10 = arith.select %7, %5, %9 : vector<8x16xi1>, vector<8x16xf32>
    %c0_7 = arith.constant 0 : index
    %c0_8 = arith.constant 0 : index
    %11 = vector.load %arg4[%c0_7, %c0_8] : memref<16x16xf32, #tpu.memory_space<vmem>>, vector<16x16xf32>
    %cst_9 = arith.constant dense<0.000000e+00> : vector<8x16xf32>
    %12 = tpu.matmul %10, %11, %cst_9 {dimension_numbers = #tpu.dot_dimension_numbers<[1], [0], [0], [1], [0, 0, 1, 1], [], []>} : vector<8x16xf32>, vector<16x16xf32>, vector<8x16xf32> -> vector<8x16xf32>
    %c0_10 = arith.constant 0 : index
    %c0_11 = arith.constant 0 : index
    %13 = vector.load %arg5[%c0_10, %c0_11] : memref<1x16xf32, #tpu.memory_space<vmem>>, vector<1x16xf32>
    %14 = vector.broadcast %13 : vector<1x16xf32> to vector<8x16xf32>
    %15 = arith.addf %12, %14 : vector<8x16xf32>
    %cst_12 = arith.constant 0.000000e+00 : f32
    %16 = vector.broadcast %cst_12 : f32 to vector<8x16xf32>
    %17 = arith.cmpf oge, %15, %16 : vector<8x16xf32>
    %cst_13 = arith.constant 0.00999999977 : f32
    %18 = vector.broadcast %cst_13 : f32 to vector<8x16xf32>
    %19 = arith.mulf %18, %15 : vector<8x16xf32>
    %20 = arith.select %17, %15, %19 : vector<8x16xi1>, vector<8x16xf32>
    %21 = arith.truncf %20 : vector<8x16xf32> to vector<8x16xbf16>
    %c0_14 = arith.constant 0 : index
    %c0_15 = arith.constant 0 : index
    %22 = vector.load %arg8[%c0_14, %c0_15] : memref<8x16xbf16, #tpu.memory_space<vmem>>, vector<8x16xbf16>
    tpu.vector_store %arg8[%c0_14, %c0_15], %21 {strides = array<i32>} : memref<8x16xbf16, #tpu.memory_space<vmem>>, vector<8x16xbf16>,
    %c0_16 = arith.constant 0 : index
    %c0_17 = arith.constant 0 : index
    %23 = vector.load %arg6[%c0_16, %c0_17] : memref<16x16xf32, #tpu.memory_space<vmem>>, vector<16x16xf32>
    %cst_18 = arith.constant dense<0.000000e+00> : vector<8x16xf32>
    %24 = tpu.matmul %20, %23, %cst_18 {dimension_numbers = #tpu.dot_dimension_numbers<[1], [0], [0], [1], [0, 0, 1, 1], [], []>} : vector<8x16xf32>, vector<16x16xf32>, vector<8x16xf32> -> vector<8x16xf32>
    %c0_19 = arith.constant 0 : index
    %c0_20 = arith.constant 0 : index
    %25 = vector.load %arg7[%c0_19, %c0_20] : memref<1x16xf32, #tpu.memory_space<vmem>>, vector<1x16xf32>
    %26 = vector.broadcast %25 : vector<1x16xf32> to vector<8x16xf32>
    %27 = arith.addf %24, %26 : vector<8x16xf32>
    %28 = arith.truncf %27 : vector<8x16xf32> to vector<8x16xbf16>
    %c0_21 = arith.constant 0 : index
    %c0_22 = arith.constant 0 : index
    %29 = vector.load %arg9[%c0_21, %c0_22] : memref<8x16xbf16, #tpu.memory_space<vmem>>, vector<8x16xbf16>
    tpu.vector_store %arg9[%c0_21, %c0_22], %28 {strides = array<i32>} : memref<8x16xbf16, #tpu.memory_space<vmem>>, vector<8x16xbf16>,
    return
  }
  func.func @transform_0(%arg0: i32) -> (i32, i32) {
    %c0_i32 = arith.constant 0 : i32
    %c0_i32_0 = arith.constant 0 : i32
    return %arg0, %c0_i32 : i32, i32
  }
  func.func @transform_1(%arg0: i32) -> (i32, i32) {
    %c0_i32 = arith.constant 0 : i32
    %c0_i32_0 = arith.constant 0 : i32
    %c0_i32_1 = arith.constant 0 : i32
    return %c0_i32, %c0_i32_0 : i32, i32
  }
  func.func @transform_2(%arg0: i32) -> (i32, i32) {
    %c0_i32 = arith.constant 0 : i32
    %c0_i32_0 = arith.constant 0 : i32
    %c0_i32_1 = arith.constant 0 : i32
    return %c0_i32, %c0_i32_0 : i32, i32
  }
  func.func @transform_3(%arg0: i32) -> (i32, i32) {
    %c0_i32 = arith.constant 0 : i32
    %c0_i32_0 = arith.constant 0 : i32
    %c0_i32_1 = arith.constant 0 : i32
    return %c0_i32, %c0_i32_0 : i32, i32
  }
  func.func @transform_4(%arg0: i32) -> (i32, i32) {
    %c0_i32 = arith.constant 0 : i32
    %c0_i32_0 = arith.constant 0 : i32
    %c0_i32_1 = arith.constant 0 : i32
    return %c0_i32, %c0_i32_0 : i32, i32
  }
  func.func @transform_5(%arg0: i32) -> (i32, i32) {
    %c0_i32 = arith.constant 0 : i32
    %c0_i32_0 = arith.constant 0 : i32
    %c0_i32_1 = arith.constant 0 : i32
    return %c0_i32, %c0_i32_0 : i32, i32
  }
  func.func @transform_6(%arg0: i32) -> (i32, i32) {
    %c0_i32 = arith.constant 0 : i32
    %c0_i32_0 = arith.constant 0 : i32
    %c0_i32_1 = arith.constant 0 : i32
    return %c0_i32, %c0_i32_0 : i32, i32
  }
  func.func @transform_7(%arg0: i32) -> (i32, i32) {
    %c0_i32 = arith.constant 0 : i32
    %c0_i32_0 = arith.constant 0 : i32
    return %arg0, %c0_i32 : i32, i32
  }
  func.func @transform_8(%arg0: i32) -> (i32, i32) {
    %c0_i32 = arith.constant 0 : i32
    %c0_i32_0 = arith.constant 0 : i32
    return %arg0, %c0_i32 : i32, i32
  }
}

</mosaic_0001>

<bundles_post_ra>
// kernel: tpu_custom_call.1
= control target key start
LH: loop header
LB: loop body
LE: loop exit
PB: predicated region body
PF: predicated region fallthrough
CT: control target
= control target key end

     0   :  { %14 = vsyncpa [#allocation3], 0  ;;  %s645_s0 = inlined_call_operand.hbm [shape: f32[8,16], index: 0, kind: input, shape index: {}]   ;;  %s646_s1 = inlined_call_operand.hbm [shape: f32[16,16], index: 1, kind: input, shape index: {}]   ;;  %s647_s2 = inlined_call_operand.vmem [shape: f32[1,16], index: 2, kind: input, shape index: {}]   ;;  %s648_s3 = inlined_call_operand.hbm [shape: f32[16,16], index: 3, kind: input, shape index: {}]   ;;  %s649_s4 = inlined_call_operand.vmem [shape: f32[1,16], index: 4, kind: input, shape index: {}]   ;;  %s650_s5 = inlined_call_operand.hbm [shape: f32[16,16], index: 5, kind: input, shape index: {}]   ;;  %s651_s6 = inlined_call_operand.vmem [shape: f32[1,16], index: 6, kind: input, shape index: {}]   ;;  %s652_s7 = inlined_call_operand.hbm [shape: bf16[8,16], index: 7, kind: output, shape index: {0}]   ;;  %s653_s8 = inlined_call_operand.hbm [shape: bf16[8,16], index: 8, kind: output, shape index: {1}]  }
   0x1   :  { %15 = vsyncpa [#allocation6], 0 }
   0x2   :  { %16 = vsyncpa [#allocation9], 0 }
   0x3   :  { %17 = vsyncpa [#allocation4], 0 }
   0x4   :  { %18 = vsyncpa [#allocation12], 0  ;;  %s549_s27 = smov [#allocation5]  }
   0x5   :  { %s34_s28 = sshll.u32 %s549_s27, 4  ;;  %s35_s28 = int_to_ptr.vmem [resolvable:$true] %s34_s28 }
   0x6   :  { %s427_s29 = scalar_lea.vmem %s35_s28, 256  ;;  %p432_p1 = scmp.lt.s32.totalorder %s35_s28, %s35_s28 }
   0x7   :  { %p428_p0 = scmp.ne.s32.totalorder %s35_s28, %s427_s29  ;;  %p433_p2 = scmp.lt.s32.totalorder %s427_s29, %s427_s29 }
   0x9   :  { %p434_p3 = por %p433_p2, %p432_p1 }
   0xb   :  { %p435_p4 = pnand %p434_p3, %p428_p0 }
   0xd   :  { %438 = shalt.err (!%p435_p4)
}
   0xe   :  { %s550_s30 = smov 128   ;;  %s551_s9 = smov 8  }
   0xf   :  { %40 = dma.hbm_to_vmem [thread:$0]  %s646_s1, 256, %s35_s28, [#allocation6], %s550_s30, %s550_s30, %s551_s9  }
  0x10   :  { %s552_s12 = smov [#allocation2]   ;;  %s553_s14 = smov [#allocation7]  }
  0x11   :  { %s25_s13 = sshll.u32 %s552_s12, 4  ;;  %s48_s15 = sshll.u32 %s553_s14, 4  ;;  %s26_s13 = int_to_ptr.vmem [resolvable:$true] %s25_s13  ;;  %s49_s15 = int_to_ptr.vmem [resolvable:$true] %s48_s15 }
  0x12   :  { %s447_s16 = scalar_lea.vmem %s26_s13, 128  ;;  %p452_p6 = scmp.lt.s32.totalorder %s26_s13, %s26_s13 }
  0x13   :  { %p448_p5 = scmp.ne.s32.totalorder %s26_s13, %s447_s16  ;;  %p453_p7 = scmp.lt.s32.totalorder %s447_s16, %s447_s16 }
  0x15   :  { %p454_p8 = por %p453_p7, %p452_p6 }
  0x17   :  { %p455_p9 = pnand %p454_p8, %p448_p5 }
  0x19   :  { %458 = shalt.err (!%p455_p9)
}
  0x1a   :  { %28 = dma.hbm_to_vmem [thread:$0]  %s645_s0, 128, %s26_s13, [#allocation3]  }
  0x1b   :  { %s467_s19 = scalar_lea.vmem %s49_s15, 256  ;;  %p472_p11 = scmp.lt.s32.totalorder %s49_s15, %s49_s15 }
  0x1c   :  { %p468_p10 = scmp.ne.s32.totalorder %s49_s15, %s467_s19  ;;  %p473_p12 = scmp.lt.s32.totalorder %s467_s19, %s467_s19 }
  0x1e   :  { %p474_p13 = por %p473_p12, %p472_p11 }
  0x20   :  { %p475_p0 = pnand %p474_p13, %p468_p10 }
  0x22   :  { %478 = shalt.err (!%p475_p0)
}
  0x23   :  { %54 = dma.hbm_to_vmem [thread:$0]  %s648_s3, 256, %s49_s15, [#allocation6], %s550_s30, %s550_s30, %s551_s9  }
  0x24   :  { %s554_s21 = smov [#allocation8]  }
  0x25   :  { %s62_s22 = sshll.u32 %s554_s21, 4  ;;  %s63_s22 = int_to_ptr.vmem [resolvable:$true] %s62_s22 }
  0x26   :  { %s487_s23 = scalar_lea.vmem %s63_s22, 256  ;;  %p492_p2 = scmp.lt.s32.totalorder %s63_s22, %s63_s22 }
  0x27   :  { %p488_p1 = scmp.ne.s32.totalorder %s63_s22, %s487_s23  ;;  %p493_p3 = scmp.lt.s32.totalorder %s487_s23, %s487_s23 }
  0x29   :  { %p494_p4 = por %p493_p3, %p492_p2 }
  0x2b   :  { %p495_p5 = pnand %p494_p4, %p488_p1 }
  0x2d   :  { %498 = shalt.err (!%p495_p5)
}
  0x2e   :  { %68 = dma.hbm_to_vmem [thread:$0]  %s650_s5, 256, %s63_s22, [#allocation9], %s550_s30, %s550_s30, %s551_s9  }
  0x2f   :  { %539 = dma.done.wait [#allocation3], 128  }
  0x30   :  { %540 = vsyncadd [#allocation3], 4294967168 }
  0x31   :  { %541 = dma.done.wait [#allocation6], 512  }
  0x32   :  { %542 = vsyncadd [#allocation6], 4294966784 }
  0x33   :  { %543 = dma.done.wait [#allocation9], 256  }
  0x34   :  { %544 = vsyncadd [#allocation9], 4294967040  ;;  %v555_v0 = vmov 0.0   ;;  %vm556_vm0 = vmmov 0   ;;  %v85_v1 = vld [vmem:[#allocation5 + $0x8] sm:$0xff]  ;;  %v84_v2 = vld [vmem:[#allocation5] sm:$0xff] }
  0x35   :  { %388 = vmatprep.subr.mxu0 %v555_v0  ;;  %392 = vmatprep.mubr.msk.f32.mxu0 %vm556_vm0, %v555_v0  ;;  %v83_v3 = vld [vmem:[#allocation2] sm:$0xff]  ;;  %vm93_vm1 = vcmask 130048   ;;  %v170_v5 = vld [vmem:[#allocation7] sm:$0xff]  ;;  %v259_v12 = vld [vmem:[#allocation8 + $0x8] sm:$0xff]  ;;  %vm256_vm4 = vcmask 125952  }
  0x36   :  { %395 = vmatprep.subr.mxu1 %v555_v0  ;;  %399 = vmatprep.mubr.msk.f32.mxu1 %vm556_vm0, %v555_v0  ;;  %v171_v4 = vld [vmem:[#allocation7 + $0x8] sm:$0xff]  ;;  %v258_v13 = vld [vmem:[#allocation8] sm:$0xff] }
  0x37   :  { %389 = vmatpush3.msra.mxu0 %v85_v1  ;;  %396 = vmatpush3.msra.mxu1 %v171_v4  ;;  %v373_v6 = vld [vmem:[%s647_s2] ss:$0 sm:$0xff]  ;;  %s557_s2 = smov [#allocation10]  }
  0x38   :  { %390 = vmatprep.subr.mxu0 %v555_v0  ;;  %397 = vmatprep.subr.mxu1 %v555_v0  ;;  %v375_v14 = vld [vmem:[%s649_s4] ss:$0 sm:$0xff]  ;;  %s348_s27 = sshll.u32 %s557_s2, 4  ;;  %s349_s27 = int_to_ptr.vmem [resolvable:$true] %s348_s27 }
  0x39   :  { %391 = vmatpush3.msra.mxu0 %v84_v2  ;;  %398 = vmatpush3.msra.mxu1 %v170_v5  ;;  %s499_s28 = scalar_lea.vmem %s349_s27, 64  ;;  %p504_p7 = scmp.lt.s32.totalorder %s349_s27, %s349_s27 }
  0x3a   :  { %393 = vmatmul.mubr.msk.f32.vlgmr.msra.gmra.mxu0 %vm93_vm1, %v83_v3  ;;  %402 = vmatprep.subr.mxu0 %v555_v0  ;;  %p500_p6 = scmp.ne.s32.totalorder %s349_s27, %s499_s28  ;;  %p505_p8 = scmp.lt.s32.totalorder %s499_s28, %s499_s28 }
  0x3b   :  { %406 = vmatprep.mubr.msk.f32.mxu0 %vm556_vm0, %v555_v0  ;;  %403 = vmatpush3.msra.mxu0 %v259_v12 }
  0x3c   :  { %404 = vmatprep.subr.mxu0 %v555_v0  ;;  %p506_p9 = por %p505_p8, %p504_p7 }
  0x3d   :  { %405 = vmatpush3.msra.mxu0 %v258_v13 }
  0x3e   :  { %p507_p10 = pnand %p506_p9, %p500_p6 }
  0xfa   :  { %v163_v7 = vpop.f32.mrf.mxu0 }
  0xfb   :  { %v164_v8 = vadd.f32 %v373_v6, %v163_v7 }
  0xfc   :  { %v394_v9 = vpop.f32.mrf.mxu0 }
  0xfd   :  { %vm167_vm2 = vcmp.ge.f32.partialorder %v164_v8, 0.0  ;;  %v168_v10 = vmul.f32 0.01, %v164_v8 }
  0xff   :  { %v169_v11 = vsel %vm167_vm2, %v164_v8, %v168_v10 }
 0x100   :  { %400 = vmatmul.mubr.msk.f32.vlgmr.msra.gmra.mxu1 %vm93_vm1, %v169_v11 }
 0x1c0   :  { %v248_v15 = vpop.f32.mrf.mxu1 }
 0x1c1   :  { %v249_v16 = vadd.f32 %v375_v14, %v248_v15 }
 0x1c2   :  { %v401_v17 = vpop.f32.mrf.mxu1 }
 0x1c3   :  { %vm252_vm3 = vcmp.ge.f32.partialorder %v249_v16, 0.0  ;;  %v253_v18 = vmul.f32 0.01, %v249_v16 }
 0x1c5   :  { %v254_v19 = vsel %vm252_vm3, %v249_v16, %v253_v18 }
 0x1c6   :  { %v255_v20 = vpack.c.bf16 %v254_v19, %v254_v19  ;;  %407 = vmatmul.mubr.msk.f32.vlgmr.msra.gmra.mxu0 %vm93_vm1, %v254_v19 }
 0x1c8   :  { %257 = vst.msk [vmem:[#allocation10] sm:$0xf] %vm256_vm4, %v255_v20 }
 0x1c9   :  { %510 = shalt.err (!%p507_p10)
}
 0x1ca   :  { %351 = dma.vmem_to_hbm [thread:$0]  %s349_s27, 64, %s652_s7, [#allocation4]   ;;  %v377_v21 = vld [vmem:[%s651_s6] ss:$0 sm:$0xff] }
 0x1cb   :  { %s558_s10 = smov [#allocation11]  }
 0x1cc   :  { %s358_s11 = sshll.u32 %s558_s10, 4  ;;  %s359_s11 = int_to_ptr.vmem [resolvable:$true] %s358_s11 }
 0x1cd   :  { %s519_s12 = scalar_lea.vmem %s359_s11, 64  ;;  %p524_p12 = scmp.lt.s32.totalorder %s359_s11, %s359_s11 }
 0x1ce   :  { %p520_p11 = scmp.ne.s32.totalorder %s359_s11, %s519_s12  ;;  %p525_p13 = scmp.lt.s32.totalorder %s519_s12, %s519_s12 }
 0x1d0   :  { %p526_p0 = por %p525_p13, %p524_p12 }
 0x1d2   :  { %p527_p1 = pnand %p526_p0, %p520_p11 }
 0x286   :  { %v336_v22 = vpop.f32.mrf.mxu0 }
 0x287   :  { %v337_v23 = vadd.f32 %v377_v21, %v336_v22 }
 0x288   :  { %v408_v24 = vpop.f32.mrf.mxu0 }
 0x289   :  { %v340_v25 = vpack.c.bf16 %v337_v23, %v337_v23 }
 0x28b   :  { %341 = vst.msk [vmem:[#allocation11] sm:$0xf] %vm256_vm4, %v340_v25 }
 0x28c   :  { %530 = shalt.err (!%p527_p1)
}
 0x28d   :  { %361 = dma.vmem_to_hbm [thread:$0]  %s359_s11, 64, %s653_s8, [#allocation12]  }
 0x28e   :  { %545 = dma.done.wait [#allocation4], 64  }
 0x28f   :  { %546 = vsyncadd [#allocation4], 4294967232 }
 0x290   :  { %547 = dma.done.wait [#allocation12], 64  }
 0x291   :  { %548 = vsyncadd [#allocation12], 4294967232 }
 0x292   :  { %368 = vsyncpa [#allocation3], 1 }
 0x293   :  { %369 = vsyncpa [#allocation6], 1 }
 0x294   :  { %370 = vsyncpa [#allocation9], 1 }
 0x295   :  { %371 = vsyncpa [#allocation4], 1 }
 0x296   :  { %372 = vsyncpa [#allocation12], 1 }

</bundles_post_ra>
